<compile_context>
chip_gen: v7x
topology: tpu7x:2x2x1
jax: 0.10.0
libtpu: 0.0.40
codegen_flags: <defaults>
</compile_context>

<pallas_src>
import functools

import jax
import jax.numpy as jnp
from jax.experimental import pallas as pl
from jax.experimental.pallas import tpu as pltpu


# Large negative used to mask classes out of a logsumexp (select-based masking
# replaces the reference's `x - labels*inf`; identical for {0,1} labels).
_MASK_VALUE = -0.7 * float(jnp.finfo(jnp.float32).max)

# VMEM accounting: ~5 live f32 temporaries per block (logits, x, z_neg, z_pos,
# exp) plus double-buffered native-dtype input blocks must stay well under
# v7x's 64 MiB physical VMEM (v5e/v6e have 128 MiB, so this is conservative
# there but still gives multi-MiB streamed blocks).
_VMEM_BUDGET_BYTES = 40 * 1024 * 1024
_VMEM_LIMIT_BYTES = 48 * 1024 * 1024
_NUM_F32_TEMPS = 5


def _round_up(x, m):
    return (x + m - 1) // m * m


def _default_num_splits():
    """2 on dual-TensorCore chips (v4/v5p/v7x); 1 on v5e/v6e where an extra
    'parallel' split is just a serial outer loop + extra init/finalize."""
    try:
        kind = jax.devices()[0].device_kind.lower()
    except Exception:
        return 1
    if any(tag in kind for tag in ("v4", "v5p", "v7", "7x")):
        return 2
    return 1


def _circle_loss_kernel(logits_ref, labels_ref, out_ref, acc_ref, *,
                        n_rows, rows_per_block, reduction):
    """One (rows_per_block, C) block of rows; classes live on the lane axis."""
    s = pl.program_id(0)                # TensorCore split (parallel)
    j = pl.program_id(1)                # row-block sweep (arbitrary carry)
    nj = pl.num_programs(1)

    @pl.when(j == 0)
    def _():
        acc_ref[...] = jnp.zeros_like(acc_ref)

    # Stream narrow dtypes; upcast logits to f32 in-kernel (VPU work hidden
    # under the DMA).  Labels are never upcast: `> 0` runs on the native dtype
    # and the sign flip is a select.  NOTE: matches the PyTorch module only
    # for strictly binary {0,1} labels (soft labels behave differently in the
    # reference's additive -inf formulation).
    logits = logits_ref[...].astype(jnp.float32)
    pos = labels_ref[...] > 0

    x = jnp.where(pos, -logits, logits)        # (1 - 2*labels) * logits
    z_neg = jnp.where(pos, _MASK_VALUE, x)     # positives masked out
    z_pos = jnp.where(pos, x, _MASK_VALUE)     # negatives masked out

    def lse_with_zero(z):
        # logsumexp over the class axis of [z, 0] (the appended zero column),
        # numerically identical to torch.logsumexp on the concatenated tensor.
        m = jnp.maximum(jnp.max(z, axis=1, keepdims=True), 0.0)
        t = jnp.sum(jnp.exp(z - m), axis=1, keepdims=True) + jnp.exp(-m)
        return m + jnp.log(t)

    row_loss = lse_with_zero(z_neg) + lse_with_zero(z_pos)        # (rpb, 1)

    # Mask ragged / duplicated tail rows (global row id >= n_rows).  Garbage
    # (even NaN/Inf) from the partially-copied last block is discarded here,
    # so no host-side padding is needed.
    base = (s * nj + j) * rows_per_block
    ids = base + jax.lax.broadcasted_iota(jnp.int32, row_loss.shape, 0)
    row_loss = jnp.where(ids < n_rows, row_loss, 0.0)

    # One sublane/cross-vreg reduce per block into a tiny accumulator
    # (cheaper on the vst slot than a lane-sparse (rpb, 1) RMW every step).
    acc_ref[...] += jnp.sum(row_loss, keepdims=True)

    @pl.when(j == nj - 1)
    def _():
        total = acc_ref[...]                                      # (1, 1)
        if reduction == 'mean':
            total = total / jnp.float32(n_rows)
        out_ref[...] = jnp.broadcast_to(total, out_ref.shape)


def multilabel_circle_loss(logits, labels, reduction='mean', inf=1e12,
                           target_block_bytes=4 * 1024 * 1024,
                           num_splits=None):
    """JAX/Pallas equivalent of MultiLabelCircleLoss.forward.

    Matches the PyTorch module for binary {0,1} labels; `reduction='mean'`
    averages over rows, anything else sums (exactly like the reference).
    """
    del inf  # select-based masking (_MASK_VALUE) replaces the additive -inf.
    batch_size, label_size = logits.shape[:2]
    n = batch_size * label_size

    # Flatten exactly like the PyTorch module.  No pad, no transpose, no
    # upcast: logits/labels are streamed by the kernel in their input dtype.
    logits2d = jnp.reshape(logits, (n, -1))
    labels2d = jnp.reshape(labels, (n, -1))
    if labels2d.dtype == jnp.bool_:
        labels2d = labels2d.astype(jnp.int8)
    c = logits2d.shape[1]

    l_isz = logits2d.dtype.itemsize
    b_isz = labels2d.dtype.itemsize

    # Sublane multiple required by the (8,128)/(16,128)/(32,128) tilings.
    mult = max(8, 32 // l_isz, 32 // b_isz)

    # Rows per block: hit ~target_block_bytes of *streamed* logits per step,
    # but keep live VMEM (f32 temporaries + double-buffered inputs, minor dim
    # lane-padded to 128) inside the budget so v7x (64 MiB) never spills.
    c_pad = _round_up(c, 128)
    rpb_stream = target_block_bytes // max(c * l_isz, 1)
    vmem_per_row = c_pad * (4 * _NUM_F32_TEMPS + 2 * (l_isz + b_isz))
    rpb_vmem = _VMEM_BUDGET_BYTES // vmem_per_row
    rpb = max(mult, (min(rpb_stream, rpb_vmem) // mult) * mult)
    rpb = min(rpb, _round_up(n, mult))
    # TODO(synk): tile the class axis (two-pass / online logsumexp) for C so
    # large that even a `mult`-row block of f32 temporaries exceeds the budget.

    n_blocks = pl.cdiv(n, rpb)
    n_splits = num_splits if num_splits is not None else _default_num_splits()
    n_splits = max(1, min(int(n_splits), n_blocks))
    bps = pl.cdiv(n_blocks, n_splits)          # row-blocks per split

    # With 2 splits and an odd block count, the second split's phantom block
    # is clamped onto the ragged tail block (a small duplicate DMA) and its
    # rows are masked to zero in-kernel — no host padding, no full extra block.
    def in_map(s, j):
        return (jnp.minimum(s * bps + j, n_blocks - 1), 0)

    kernel = functools.partial(
        _circle_loss_kernel, n_rows=n, rows_per_block=rpb, reduction=reduction)

    out_rows = n_splits * 8
    cost = pl.CostEstimate(
        flops=int(15 * n * c),
        transcendentals=int(2 * n * c),
        bytes_accessed=int(n * c * (l_isz + b_isz) + out_rows * 128 * 4),
    )

    out = pl.pallas_call(
        kernel,
        out_shape=jax.ShapeDtypeStruct((out_rows, 128), jnp.float32),
        grid_spec=pltpu.PrefetchScalarGridSpec(
            num_scalar_prefetch=0,
            grid=(n_splits, bps),
            in_specs=[
                pl.BlockSpec((rpb, c), in_map),
                pl.BlockSpec((rpb, c), in_map),
            ],
            out_specs=pl.BlockSpec((8, 128), lambda s, j: (s, 0)),
            scratch_shapes=[pltpu.VMEM((1, 1), jnp.float32)],
        ),
        compiler_params=pltpu.CompilerParams(
            dimension_semantics=("parallel", "arbitrary"),
            vmem_limit_bytes=_VMEM_LIMIT_BYTES,
        ),
        cost_estimate=cost,
    )(logits2d, labels2d)

    # One partial per split (replicated across its 8x128 block); finish here.
    return jnp.sum(out[::8, 0])


def _reference(logits, labels, reduction='mean', inf=1e12):
    """Pure-JAX reference mirroring the PyTorch module exactly."""
    batch_size, label_size = logits.shape[:2]
    labels = jnp.reshape(labels, (batch_size * label_size, -1)).astype(jnp.float32)
    logits = jnp.reshape(logits, (batch_size * label_size, -1)).astype(jnp.float32)
    logits = (1 - 2 * labels) * logits
    logits_neg = logits - labels * inf
    logits_pos = logits - (1 - labels) * inf
    zeros = jnp.zeros_like(logits[..., :1])
    logits_neg = jnp.concatenate([logits_neg, zeros], axis=-1)
    logits_pos = jnp.concatenate([logits_pos, zeros], axis=-1)
    neg_loss = jax.scipy.special.logsumexp(logits_neg, axis=-1)
    pos_loss = jax.scipy.special.logsumexp(logits_pos, axis=-1)
    loss = neg_loss + pos_loss
    return jnp.mean(loss) if reduction == 'mean' else jnp.sum(loss)


if __name__ == "__main__":
    key = jax.random.PRNGKey(0)
    k1, k2, k3, k4, k5, k6 = jax.random.split(key, 6)

    # 0) The module docstring example (2D inputs, effective C = 1).
    label0 = jnp.array([[1, 1, 1, 1], [0, 0, 0, 1]], dtype=jnp.float32)
    logit0 = jnp.array([[0, 1, 1, 0], [1, 0, 0, 1]], dtype=jnp.float32)
    loss0 = jax.block_until_ready(multilabel_circle_loss(logit0, label0))
    ref0 = _reference(logit0, label0)
    assert jnp.allclose(loss0, ref0, rtol=1e-5, atol=1e-4), (loss0, ref0)

    # 1) Small-C path, forced 2-way split, odd block count (clamped phantom
    #    block) and a ragged last block — exercises the no-pad masking, 'mean'.
    logits1 = jax.random.normal(k1, (2, 40, 32), dtype=jnp.float32)
    labels1 = (jax.random.uniform(k2, (2, 40, 32)) > 0.5).astype(jnp.float32)
    loss1 = jax.block_until_ready(
        multilabel_circle_loss(logits1, labels1, reduction='mean',
                               target_block_bytes=4 * 1024, num_splits=2))
    ref1 = _reference(logits1, labels1, reduction='mean')
    assert jnp.allclose(loss1, ref1, rtol=1e-5, atol=1e-4), (loss1, ref1)

    # 2) Wide-C path with narrow streamed dtypes (bf16 logits, int8 labels),
    #    multi-block row sweep, ragged tail, auto core split, 'sum'.
    logits2 = jax.random.normal(k3, (3, 33, 128), dtype=jnp.float32).astype(jnp.bfloat16)
    labels2 = (jax.random.uniform(k4, (3, 33, 128)) > 0.5).astype(jnp.int8)
    loss2 = jax.block_until_ready(
        multilabel_circle_loss(logits2, labels2, reduction='sum',
                               target_block_bytes=16 * 1024))
    ref2 = _reference(logits2, labels2, reduction='sum')
    assert jnp.allclose(loss2, ref2, rtol=2e-5, atol=1e-3), (loss2, ref2)

    # 3) Tiny C with default block sizing (single block), bool labels, 'mean'.
    logits3 = jax.random.normal(k5, (4, 64, 8), dtype=jnp.float32)
    labels3 = jax.random.uniform(k6, (4, 64, 8)) > 0.5
    loss3 = jax.block_until_ready(
        multilabel_circle_loss(logits3, labels3, reduction='mean'))
    ref3 = _reference(logits3, labels3.astype(jnp.float32), reduction='mean')
    assert jnp.allclose(loss3, ref3, rtol=1e-5, atol=1e-4), (loss3, ref3)

    print("KERNEL_OK")
</pallas_src>

<mosaic_0001>
module attributes {stable_mosaic.version = 11 : i64} {
  func.func @_circle_loss_kernel(%arg0: i32, %arg1: i32, %arg2: memref<8x1xf32, #tpu.memory_space<vmem>>, %arg3: memref<8x1xf32, #tpu.memory_space<vmem>>, %arg4: memref<8x128xf32, #tpu.memory_space<vmem>>, %arg5: memref<1x1xf32, #tpu.memory_space<vmem>>) attributes {dimension_semantics = [#tpu.dimension_semantics<parallel>, #tpu.dimension_semantics<arbitrary>], iteration_bounds = array<i64: 1, 1>, scalar_prefetch = 0 : i64, scratch_operands = 1 : i64, tpu.core_type = #tpu.core_type<tc>, window_params = [{transform_indices = @transform_0, window_bounds = array<i64: 8, 1>}, {transform_indices = @transform_1, window_bounds = array<i64: 8, 1>}, {transform_indices = @transform_2, window_bounds = array<i64: 8, 128>}]} {
    %c0_i32 = arith.constant 0 : i32
    %0 = arith.cmpi eq, %arg1, %c0_i32 : i32
    %1 = arith.extui %0 : i1 to i32
    %c0_i32_0 = arith.constant 0 : i32
    %2 = arith.cmpi ne, %1, %c0_i32_0 : i32
    scf.if %2 {
      %cst_24 = arith.constant 0.000000e+00 : f32
      %64 = vector.broadcast %cst_24 : f32 to vector<1x1xf32>
      %c0_25 = arith.constant 0 : index
      %c0_26 = arith.constant 0 : index
      %65 = vector.load %arg5[%c0_25, %c0_26] : memref<1x1xf32, #tpu.memory_space<vmem>>, vector<1x1xf32>
      tpu.vector_store %arg5[%c0_25, %c0_26], %64 {strides = array<i32>} : memref<1x1xf32, #tpu.memory_space<vmem>>, vector<1x1xf32>,
    } else {
    }
    %c0 = arith.constant 0 : index
    %c0_1 = arith.constant 0 : index
    %3 = vector.load %arg2[%c0, %c0_1] : memref<8x1xf32, #tpu.memory_space<vmem>>, vector<8x1xf32>
    %c0_2 = arith.constant 0 : index
    %c0_3 = arith.constant 0 : index
    %4 = vector.load %arg3[%c0_2, %c0_3] : memref<8x1xf32, #tpu.memory_space<vmem>>, vector<8x1xf32>
    %cst = arith.constant 0.000000e+00 : f32
    %5 = vector.broadcast %cst : f32 to vector<8x1xf32>
    %6 = arith.cmpf ogt, %4, %5 : vector<8x1xf32>
    %cst_4 = arith.constant 0.000000e+00 : f32
    %7 = vector.broadcast %cst_4 : f32 to vector<8x1xf32>
    %8 = arith.subf %7, %3 : vector<8x1xf32>
    %9 = arith.select %6, %8, %3 : vector<8x1xi1>, vector<8x1xf32>
    %cst_5 = arith.constant -2.38197633E+38 : f32
    %10 = vector.broadcast %cst_5 : f32 to vector<8x1xf32>
    %11 = arith.select %6, %10, %9 : vector<8x1xi1>, vector<8x1xf32>
    %cst_6 = arith.constant -2.38197633E+38 : f32
    %12 = vector.broadcast %cst_6 : f32 to vector<8x1xf32>
    %13 = arith.select %6, %9, %12 : vector<8x1xi1>, vector<8x1xf32>
    %cst_7 = arith.constant dense<0xFF800000> : vector<8xf32>
    %14 = vector.multi_reduction <maximumf>, %11, %cst_7 [1] : vector<8x1xf32> to vector<8xf32>
    %15 = vector.shape_cast %14 : vector<8xf32> to vector<8x1xf32>
    %cst_8 = arith.constant 0.000000e+00 : f32
    %16 = vector.broadcast %cst_8 : f32 to vector<8x1xf32>
    %17 = arith.maximumf %15, %16 : vector<8x1xf32>
    %18 = arith.subf %11, %17 : vector<8x1xf32>
    %19 = math.exp %18 : vector<8x1xf32>
    %cst_9 = arith.constant dense<0.000000e+00> : vector<8xf32>
    %20 = vector.multi_reduction <add>, %19, %cst_9 [1] : vector<8x1xf32> to vector<8xf32>
    %21 = vector.shape_cast %20 : vector<8xf32> to vector<8x1xf32>
    %cst_10 = arith.constant 0.000000e+00 : f32
    %22 = vector.broadcast %cst_10 : f32 to vector<8x1xf32>
    %23 = arith.subf %22, %17 : vector<8x1xf32>
    %24 = math.exp %23 : vector<8x1xf32>
    %25 = arith.addf %21, %24 : vector<8x1xf32>
    %26 = math.log %25 : vector<8x1xf32>
    %27 = arith.addf %17, %26 : vector<8x1xf32>
    %cst_11 = arith.constant dense<0xFF800000> : vector<8xf32>
    %28 = vector.multi_reduction <maximumf>, %13, %cst_11 [1] : vector<8x1xf32> to vector<8xf32>
    %29 = vector.shape_cast %28 : vector<8xf32> to vector<8x1xf32>
    %cst_12 = arith.constant 0.000000e+00 : f32
    %30 = vector.broadcast %cst_12 : f32 to vector<8x1xf32>
    %31 = arith.maximumf %29, %30 : vector<8x1xf32>
    %32 = arith.subf %13, %31 : vector<8x1xf32>
    %33 = math.exp %32 : vector<8x1xf32>
    %cst_13 = arith.constant dense<0.000000e+00> : vector<8xf32>
    %34 = vector.multi_reduction <add>, %33, %cst_13 [1] : vector<8x1xf32> to vector<8xf32>
    %35 = vector.shape_cast %34 : vector<8xf32> to vector<8x1xf32>
    %cst_14 = arith.constant 0.000000e+00 : f32
    %36 = vector.broadcast %cst_14 : f32 to vector<8x1xf32>
    %37 = arith.subf %36, %31 : vector<8x1xf32>
    %38 = math.exp %37 : vector<8x1xf32>
    %39 = arith.addf %35, %38 : vector<8x1xf32>
    %40 = math.log %39 : vector<8x1xf32>
    %41 = arith.addf %31, %40 : vector<8x1xf32>
    %42 = arith.addf %27, %41 : vector<8x1xf32>
    %c1_i32 = arith.constant 1 : i32
    %43 = arith.muli %arg0, %c1_i32 : i32
    %44 = arith.addi %43, %arg1 : i32
    %c8_i32 = arith.constant 8 : i32
    %45 = arith.muli %44, %c8_i32 : i32
    %46 = tpu.iota {dimensions = array<i32: 0>} : vector<8x1xi32>
    %47 = vector.broadcast %45 : i32 to vector<8x1xi32>
    %48 = arith.addi %47, %46 : vector<8x1xi32>
    %c8_i32_15 = arith.constant 8 : i32
    %49 = vector.broadcast %c8_i32_15 : i32 to vector<8x1xi32>
    %50 = arith.cmpi slt, %48, %49 : vector<8x1xi32>
    %cst_16 = arith.constant 0.000000e+00 : f32
    %51 = vector.broadcast %cst_16 : f32 to vector<8x1xf32>
    %52 = arith.select %50, %42, %51 : vector<8x1xi1>, vector<8x1xf32>
    %c0_17 = arith.constant 0 : index
    %c0_18 = arith.constant 0 : index
    %53 = vector.load %arg5[%c0_17, %c0_18] : memref<1x1xf32, #tpu.memory_space<vmem>>, vector<1x1xf32>
    %54 = vector.shape_cast %52 : vector<8x1xf32> to vector<1x8x1xf32>
    %cst_19 = arith.constant dense<0.000000e+00> : vector<1xf32>
    %55 = vector.multi_reduction <add>, %54, %cst_19 [1, 2] : vector<1x8x1xf32> to vector<1xf32>
    %56 = vector.shape_cast %55 : vector<1xf32> to vector<1x1x1xf32>
    %57 = vector.extract %56[0, 0, 0] : f32 from vector<1x1x1xf32>
    %58 = vector.broadcast %57 : f32 to vector<1x1xf32>
    %59 = arith.addf %53, %58 : vector<1x1xf32>
    %c0_20 = arith.constant 0 : index
    %c0_21 = arith.constant 0 : index
    %60 = vector.load %arg5[%c0_20, %c0_21] : memref<1x1xf32, #tpu.memory_space<vmem>>, vector<1x1xf32>
    tpu.vector_store %arg5[%c0_20, %c0_21], %59 {strides = array<i32>} : memref<1x1xf32, #tpu.memory_space<vmem>>, vector<1x1xf32>,
    %c0_i32_22 = arith.constant 0 : i32
    %61 = arith.cmpi eq, %arg1, %c0_i32_22 : i32
    %62 = arith.extui %61 : i1 to i32
    %c0_i32_23 = arith.constant 0 : i32
    %63 = arith.cmpi ne, %62, %c0_i32_23 : i32
    scf.if %63 {
      %c0_24 = arith.constant 0 : index
      %c0_25 = arith.constant 0 : index
      %64 = vector.load %arg5[%c0_24, %c0_25] : memref<1x1xf32, #tpu.memory_space<vmem>>, vector<1x1xf32>
      %cst_26 = arith.constant 8.000000e+00 : f32
      %65 = vector.broadcast %cst_26 : f32 to vector<1x1xf32>
      %66 = arith.divf %64, %65 : vector<1x1xf32>
      %67 = vector.shape_cast %66 : vector<1x1xf32> to vector<1x1xf32>
      %68 = vector.broadcast %67 : vector<1x1xf32> to vector<8x128xf32>
      %c0_27 = arith.constant 0 : index
      %c0_28 = arith.constant 0 : index
      %69 = vector.load %arg4[%c0_27, %c0_28] : memref<8x128xf32, #tpu.memory_space<vmem>>, vector<8x128xf32>
      tpu.vector_store %arg4[%c0_27, %c0_28], %68 {strides = array<i32>} : memref<8x128xf32, #tpu.memory_space<vmem>>, vector<8x128xf32>,
    } else {
    }
    return
  }
  func.func @transform_0(%arg0: i32, %arg1: i32) -> (i32, i32) {
    %c1_i32 = arith.constant 1 : i32
    %0 = arith.muli %arg0, %c1_i32 : i32
    %1 = arith.addi %0, %arg1 : i32
    %c0_i32 = arith.constant 0 : i32
    %2 = arith.minsi %1, %c0_i32 : i32
    %c0_i32_0 = arith.constant 0 : i32
    %c0_i32_1 = arith.constant 0 : i32
    return %2, %c0_i32_0 : i32, i32
  }
  func.func @transform_1(%arg0: i32, %arg1: i32) -> (i32, i32) {
    %c1_i32 = arith.constant 1 : i32
    %0 = arith.muli %arg0, %c1_i32 : i32
    %1 = arith.addi %0, %arg1 : i32
    %c0_i32 = arith.constant 0 : i32
    %2 = arith.minsi %1, %c0_i32 : i32
    %c0_i32_0 = arith.constant 0 : i32
    %c0_i32_1 = arith.constant 0 : i32
    return %2, %c0_i32_0 : i32, i32
  }
  func.func @transform_2(%arg0: i32, %arg1: i32) -> (i32, i32) {
    %c0_i32 = arith.constant 0 : i32
    %c0_i32_0 = arith.constant 0 : i32
    return %arg0, %c0_i32 : i32, i32
  }
}

</mosaic_0001>

<bundles_post_ra>
// kernel: tpu_custom_call.1
= control target key start
LH: loop header
LB: loop body
LE: loop exit
PB: predicated region body
PF: predicated region fallthrough
CT: control target
= control target key end

     0   :  { %s249_s0 = inlined_call_operand.vmem [shape: f32[8,1], index: 0, kind: input, shape index: {}]   ;;  %s250_s1 = inlined_call_operand.vmem [shape: f32[8,1], index: 1, kind: input, shape index: {}]   ;;  %s251_s2 = inlined_call_operand.hbm [shape: f32[8,128], index: 2, kind: output, shape index: {}]  }
   0x1   :  { %v72_v0 = vld [vmem:[%s249_s0] sm:$0xff] }
   0x2   :  { %v73_v1 = vld [vmem:[%s250_s1] sm:$0xff] }
   0x3   :  { %7 = vsyncpa [#allocation4], 0  ;;  %vm74_vm0 = vcmp.gt.f32.partialorder %v73_v1, 0.0  ;;  %v75_v2 = vsub.f32 0.0, %v72_v0  ;;  %vm112_vm1 = vcmask 7168   ;;  %vm70_vm2 = vcmask 0  }
   0x4   :  { %v76_v3 = vsel %vm74_vm0, -2.3819763e+38, %v72_v0  ;;  %v211_v29 = vmov 0.0   ;;  %v212_v30 = vmov 0   ;;  %v134_v41 = vlaneseq  ;;  %s213_s1 = smov [#allocation3]  }
   0x5   :  { %v77_v4 = vsel %vm74_vm0, %v75_v2, -2.3819763e+38  ;;  %v78_v5 = vmax.f32 %v76_v3, 0.0  ;;  %71 = vst.msk [vmem:[#allocation2] sm:$0x1] %vm70_vm2, %v211_v29  ;;  %174 = vset.pattern.permute.xlu0 %v212_v30  ;;  %s149_s13 = sshll.u32 %s213_s1, 4  ;;  %s150_s13 = int_to_ptr.vmem [resolvable:$true] %s149_s13 }
   0x6   :  { %v90_v6 = vmax.f32 %v77_v4, 0.0  ;;  %v135_v42 = vshrl.u32 %v134_v41, 7  ;;  %s187_s14 = scalar_lea.vmem %s150_s13, 128  ;;  %p192_p1 = scmp.lt.s32.totalorder %s150_s13, %s150_s13 }
   0x7   :  { %v79_v7 = vsub.f32 %v76_v3, %v78_v5  ;;  %v83_v8 = vsub.f32 0.0, %v78_v5  ;;  %p188_p0 = scmp.ne.s32.totalorder %s150_s13, %s187_s14  ;;  %p193_p2 = scmp.lt.s32.totalorder %s187_s14, %s187_s14 }
   0x8   :  { %v91_v9 = vsub.f32 %v77_v4, %v90_v6  ;;  %v95_v10 = vsub.f32 0.0, %v90_v6  ;;  %v136_v43 = vsub.s32 0, %v135_v42 }
   0x9   :  { %v80_v11 = vmul.f32 1.442695, %v79_v7  ;;  %v84_v12 = vmul.f32 1.442695, %v83_v8  ;;  %p194_p3 = por %p193_p2, %p192_p1 }
   0xa   :  { %v92_v13 = vmul.f32 1.442695, %v91_v9  ;;  %v96_v14 = vmul.f32 1.442695, %v95_v10 }
   0xb   :  { %175 = vpow2.f32 %v80_v11  ;;  %p195_p4 = pnand %p194_p3, %p188_p0 }
   0xc   :  { %177 = vpow2.f32 %v84_v12  ;;  %v111_v38 = vld [vmem:[#allocation2] sm:$0x1] }
   0xd   :  { %179 = vpow2.f32 %v92_v13 }
   0xe   :  { %181 = vpow2.f32 %v96_v14 }
  0x15   :  { %v176_v15 = vpop.eup %175 }
  0x16   :  { %v178_v16 = vpop.eup %177 }
  0x17   :  { %v180_v17 = vpop.eup %179  ;;  %v86_v18 = vadd.f32 %v178_v16, %v176_v15 }
  0x18   :  { %v182_v19 = vpop.eup %181 }
  0x19   :  { %183 = vlog2.f32 %v86_v18  ;;  %v98_v20 = vadd.f32 %v182_v19, %v180_v17 }
  0x1b   :  { %185 = vlog2.f32 %v98_v20 }
  0x23   :  { %v184_v21 = vpop.eup %183 }
  0x24   :  { %v88_v22 = vmul.f32 0.6931472, %v184_v21 }
  0x25   :  { %v186_v23 = vpop.eup %185 }
  0x26   :  { %v89_v24 = vadd.f32 %v88_v22, %v78_v5  ;;  %v100_v25 = vmul.f32 0.6931472, %v186_v23 }
  0x28   :  { %v101_v26 = vadd.f32 %v100_v25, %v90_v6 }
  0x2a   :  { %v102_v27 = vadd.f32 %v101_v26, %v89_v24 }
  0x2c   :  { %v113_v28 = vsel %vm112_vm1, %v102_v27, 0.0 }
  0x2d   :  { %114 = vadd.xlane.f32.xlu0 %v113_v28 }
  0xba   :  { %v115_v31 = vpop.xlane.xlu0 %114 }
  0xbb   :  { %v116_v32 = vrot.slane %v115_v31, 4 }
  0xbd   :  { %v117_v33 = vadd.f32 %v116_v32, %v115_v31 }
  0xbf   :  { %v118_v34 = vrot.slane %v117_v33, 2 }
  0xc1   :  { %v119_v35 = vadd.f32 %v118_v34, %v117_v33 }
  0xc3   :  { %v120_v36 = vrot.slane %v119_v35, 1 }
  0xc5   :  { %v121_v37 = vadd.f32 %v120_v36, %v119_v35 }
  0xc7   :  { %169 = vpush %v121_v37 }
  0xf8   :  { %s170_s0 = spop %169 }
  0xf9   :  { %v123_v39 = vstv %s170_s0 }
  0xfa   :  { %v124_v40 = vadd.f32 %v123_v39, %v111_v38 }
  0xfc   :  { %126 = vst.msk [vmem:[#allocation2] sm:$0x1] %vm70_vm2, %v124_v40 }
 0x103   :  { %v130_v44 = vld [vmem:[#allocation2] sm:$0x1] }
 0x104   :  { %v132_v45 = vmul.f32 0.125, %v130_v44 }
 0x106   :  { %v137_v46 = vrot.slane %v132_v45, %v136_v43 }
 0x108   :  { %139 = vperm.xlu0 %174, %v137_v46  }
 0x187   :  { %v140_v47 = vpop.permute.xlu0 %139 }
 0x188   :  { %142 = vst [vmem:[#allocation3] sm:$0xff] %v140_v47 }
 0x189   :  { %198 = shalt.err (!%p195_p4)
}
 0x18a   :  { %s199_s17 = scalar_lea.hbm %s251_s2, 128 }
 0x18b   :  { %p200_p5 = scmp.ne.s32.totalorder %s251_s2, %s199_s17  ;;  %p203_p6 = scmp.lt.u32.totalorder %s199_s17, %s251_s2 }
 0x18d   :  { %p205_p7 = pnand %p203_p6, %p200_p5 }
 0x18f   :  { %208 = shalt.err (!%p205_p7)
}
 0x190   :  { %152 = dma.vmem_to_hbm [thread:$0]  %s150_s13, 128, %s251_s2, [#allocation4]  }
 0x191   :  { %209 = dma.done.wait [#allocation4], 128  }
 0x192   :  { %210 = vsyncadd [#allocation4], 4294967168 }
 0x193   :  { %156 = vsyncpa [#allocation4], 1 }

</bundles_post_ra>
